<compile_context>
chip_gen: v7x
topology: tpu7x:2x2x1
jax: 0.10.0
libtpu: 0.0.40
codegen_flags: <defaults>
</compile_context>

<pallas_src>
import jax
import jax.numpy as jnp
from jax.experimental import pallas as pl
from jax.experimental.pallas import tpu as pltpu


def _round_up(x, m):
    return (x + m - 1) // m * m


# ---------------------------------------------------------------------------
# Kernels
# ---------------------------------------------------------------------------
def _make_resident_kernel(tm, tk):
    """X fully VMEM-resident; reduction/identity slices taken in-kernel."""

    def kernel(a_ref, x_ref, wg_ref, bg_ref, wl_ref, o_ref):
        # a_ref  : (tm, tk)         normalized adjacency tile (compute dtype)
        # x_ref  : (n_pad, F_pad)   node features, resident (compute dtype)
        # wg_ref : (F_pad, F_pad)   GCN weight, pre-transposed (f32, resident)
        # bg_ref : (1, F_pad)       GCN bias (f32)
        # wl_ref : (F_pad, F_pad)   Linear weight, pre-transposed (f32)
        # o_ref  : (tm, F_pad)      f32 output tile, resident across k (acc)
        i = pl.program_id(0)
        k = pl.program_id(1)

        @pl.when(k == 0)
        def _init():
            o_ref[...] = jnp.zeros_like(o_ref)

        # Steady state: pure MXU accumulate of A_hat[i,k] @ X[k].
        xk = x_ref[pl.ds(pl.multiple_of(k * tk, tk), tk), :]
        o_ref[...] += jnp.dot(a_ref[...], xk,
                              preferred_element_type=jnp.float32)

        # One-shot f32 epilogue on the last reduction step.
        @pl.when(k == pl.num_programs(1) - 1)
        def _finalize():
            h = jnp.dot(o_ref[...], wg_ref[...],
                        preferred_element_type=jnp.float32) + bg_ref[...]
            h = jnp.maximum(h, 0.0)
            h = jnp.dot(h, wl_ref[...], preferred_element_type=jnp.float32)
            xi = x_ref[pl.ds(pl.multiple_of(i * tm, tm), tm), :]
            h = h + xi.astype(jnp.float32)
            o_ref[...] = jnp.maximum(h, 0.0).astype(o_ref.dtype)

    return kernel


def _streaming_kernel(a_ref, xc_ref, xr_ref, wg_ref, bg_ref, wl_ref, o_ref):
    """Fallback: X streamed per reduction block (large graphs)."""
    k = pl.program_id(1)

    @pl.when(k == 0)
    def _init():
        o_ref[...] = jnp.zeros_like(o_ref)

    o_ref[...] += jnp.dot(a_ref[...], xc_ref[...],
                          preferred_element_type=jnp.float32)

    @pl.when(k == pl.num_programs(1) - 1)
    def _finalize():
        h = jnp.dot(o_ref[...], wg_ref[...],
                    preferred_element_type=jnp.float32) + bg_ref[...]
        h = jnp.maximum(h, 0.0)
        h = jnp.dot(h, wl_ref[...], preferred_element_type=jnp.float32)
        h = h + xr_ref[...].astype(jnp.float32)
        o_ref[...] = jnp.maximum(h, 0.0).astype(o_ref.dtype)


# ---------------------------------------------------------------------------
# Wrapper
# ---------------------------------------------------------------------------
def _choose_tiles(N, tm_max, tk_max):
    n128 = _round_up(max(N, 1), 128)
    # tk: largest power-of-two multiple of 128 with <= ~10% linear pad waste.
    tk = 128
    for cand in (2048, 1024, 512, 256, 128):
        if cand > tk_max:
            continue
        if _round_up(n128, cand) <= n128 + n128 // 10:
            tk = cand
            break
    n_pad = _round_up(n128, tk)
    # tm: largest power-of-two multiple of 128 <= min(tm_max, tk).
    tm = 128
    for cand in (1024, 512, 256, 128):
        if cand <= min(tm_max, tk):
            tm = cand
            break
    # v7x megacore: keep >= 2 row tiles when possible so both TCs get work.
    while tm > 128 and n_pad // tm < 2:
        tm //= 2
    return tm, tk, n_pad


def residual_block(x, a_hat, w_gcn, b_gcn, w_ln, *,
                   tm=512, tk=1024, compute_dtype=jnp.bfloat16,
                   x_resident=None):
    """x: (N, F) f32, a_hat: (N, N) f32, w_gcn/w_ln: (F, F) (out,in), b_gcn: (F,)."""
    N, F = x.shape
    F_pad = _round_up(F, 128)
    tm, tk, n_pad = _choose_tiles(N, tm, tk)

    itemsize = jnp.dtype(compute_dtype).itemsize
    f32sz = 4

    # --- VMEM budget (double-buffered inputs; 48 MiB cap is v7x-safe) ------
    VMEM_CAP = 48 * 1024 * 1024
    margin = 4 * 1024 * 1024
    bytes_fixed = 2 * (2 * F_pad * F_pad * f32sz) + 2 * (8 * 128 * f32sz)
    bytes_a = 2 * tm * tk * itemsize
    bytes_out = 2 * tm * F_pad * f32sz
    bytes_x_res = 2 * n_pad * F_pad * itemsize
    bytes_x_stream = 2 * (tk + tm) * F_pad * itemsize
    if x_resident is None:
        x_resident = (bytes_fixed + bytes_a + bytes_out + bytes_x_res
                      + margin) <= VMEM_CAP
    vmem_needed = (bytes_fixed + bytes_a + bytes_out + margin
                   + (bytes_x_res if x_resident else bytes_x_stream))
    vmem_limit = int(min(VMEM_CAP, max(16 * 1024 * 1024,
                                       _round_up(vmem_needed, 1 << 20))))

    # --- Zero-pad operands --------------------------------------------------
    # Padded rows/cols contribute nothing to valid outputs; padded output
    # rows/cols are sliced away at the end.
    x_p = jnp.zeros((n_pad, F_pad), compute_dtype).at[:N, :F].set(
        x.astype(compute_dtype))
    a_p = jnp.zeros((n_pad, n_pad), compute_dtype).at[:N, :N].set(
        a_hat.astype(compute_dtype))
    wg_p = jnp.zeros((F_pad, F_pad), jnp.float32).at[:F, :F].set(
        w_gcn.T.astype(jnp.float32))
    wl_p = jnp.zeros((F_pad, F_pad), jnp.float32).at[:F, :F].set(
        w_ln.T.astype(jnp.float32))
    bg_p = jnp.zeros((1, F_pad), jnp.float32).at[0, :F].set(
        b_gcn.astype(jnp.float32))

    grid = (n_pad // tm, n_pad // tk)

    flops = 2 * n_pad * n_pad * F_pad + 4 * n_pad * F_pad * F_pad
    if x_resident:
        bytes_accessed = (n_pad * n_pad * itemsize        # A_hat stream
                          + n_pad * F_pad * itemsize      # X once (resident)
                          + 2 * F_pad * F_pad * f32sz     # weights
                          + n_pad * F_pad * f32sz)        # f32 output
    else:
        bytes_accessed = (n_pad * n_pad * itemsize
                          + (n_pad // tm) * n_pad * F_pad * itemsize  # X re-read
                          + n_pad * F_pad * itemsize                  # identity
                          + 2 * F_pad * F_pad * f32sz
                          + n_pad * F_pad * f32sz)
    cost = pl.CostEstimate(flops=int(flops), transcendentals=0,
                           bytes_accessed=int(bytes_accessed))

    if x_resident:
        kernel = _make_resident_kernel(tm, tk)
        in_specs = [
            pl.BlockSpec((tm, tk), lambda i, k: (i, k)),          # A_hat tile
            pl.BlockSpec((n_pad, F_pad), lambda i, k: (0, 0)),    # X resident
            pl.BlockSpec((F_pad, F_pad), lambda i, k: (0, 0)),    # Wg^T
            pl.BlockSpec((1, F_pad), lambda i, k: (0, 0)),        # bias
            pl.BlockSpec((F_pad, F_pad), lambda i, k: (0, 0)),    # Wl^T
        ]
        args = (a_p, x_p, wg_p, bg_p, wl_p)
    else:
        kernel = _streaming_kernel
        in_specs = [
            pl.BlockSpec((tm, tk), lambda i, k: (i, k)),          # A_hat tile
            pl.BlockSpec((tk, F_pad), lambda i, k: (k, 0)),       # X (reduction)
            pl.BlockSpec((tm, F_pad), lambda i, k: (i, 0)),       # X (identity)
            pl.BlockSpec((F_pad, F_pad), lambda i, k: (0, 0)),    # Wg^T
            pl.BlockSpec((1, F_pad), lambda i, k: (0, 0)),        # bias
            pl.BlockSpec((F_pad, F_pad), lambda i, k: (0, 0)),    # Wl^T
        ]
        args = (a_p, x_p, x_p, wg_p, bg_p, wl_p)

    out = pl.pallas_call(
        kernel,
        out_shape=jax.ShapeDtypeStruct((n_pad, F_pad), jnp.float32),
        grid_spec=pltpu.PrefetchScalarGridSpec(
            num_scalar_prefetch=0,
            grid=grid,
            in_specs=in_specs,
            out_specs=pl.BlockSpec((tm, F_pad), lambda i, k: (i, 0)),
        ),
        compiler_params=pltpu.CompilerParams(
            dimension_semantics=("parallel", "arbitrary"),
            vmem_limit_bytes=vmem_limit,
        ),
        cost_estimate=cost,
    )(*args)

    return out[:N, :F]


def build_gcn_adjacency(edge_index, num_nodes):
    """Dense normalized adjacency matching torch_geometric GCNConv defaults
    (add_self_loops=True, normalize=True, sum aggregation)."""
    row, col = edge_index[0], edge_index[1]           # edges: src -> dst
    loops = jnp.arange(num_nodes, dtype=edge_index.dtype)
    row = jnp.concatenate([row, loops])
    col = jnp.concatenate([col, loops])
    ew = jnp.ones(row.shape[0], dtype=jnp.float32)
    deg = jnp.zeros((num_nodes,), jnp.float32).at[col].add(ew)
    dinv = jnp.where(deg > 0, 1.0 / jnp.sqrt(deg), 0.0)
    norm = dinv[row] * dinv[col]
    a_hat = jnp.zeros((num_nodes, num_nodes), jnp.float32).at[col, row].add(norm)
    return a_hat


if __name__ == "__main__":
    key = jax.random.PRNGKey(0)
    k_x, k_e, k_wg, k_bg, k_wl = jax.random.split(key, 5)

    N = 16            # number of graph nodes
    F = 32            # outfeature
    E = 40            # number of directed edges

    x = jax.random.normal(k_x, (N, F), dtype=jnp.float32)
    edge_index = jax.random.randint(k_e, (2, E), 0, N, dtype=jnp.int32)

    # GCNConv(F, F): weight (F, F), bias (F,); Linear(F, F, bias=False): (F, F)
    w_gcn = jax.random.normal(k_wg, (F, F), dtype=jnp.float32) * 0.1
    b_gcn = jax.random.normal(k_bg, (F,), dtype=jnp.float32) * 0.1
    w_ln = jax.random.normal(k_wl, (F, F), dtype=jnp.float32) * 0.1

    a_hat = build_gcn_adjacency(edge_index, N)

    # pure-JAX reference of the same math
    ref = a_hat @ (x @ w_gcn.T) + b_gcn[None, :]
    ref = jnp.maximum(ref, 0.0)
    ref = ref @ w_ln.T + x
    ref = jnp.maximum(ref, 0.0)

    # f32 streams, resident-X kernel: tight check
    out_f32 = jax.block_until_ready(
        residual_block(x, a_hat, w_gcn, b_gcn, w_ln,
                       compute_dtype=jnp.float32))
    assert out_f32.shape == (N, F)
    assert jnp.allclose(out_f32, ref, atol=1e-4, rtol=1e-4)

    # f32 streams, forced streaming-X fallback kernel: tight check
    out_stream = jax.block_until_ready(
        residual_block(x, a_hat, w_gcn, b_gcn, w_ln,
                       compute_dtype=jnp.float32, x_resident=False))
    assert jnp.allclose(out_stream, ref, atol=1e-4, rtol=1e-4)

    # Default bf16 A_hat/X streams (f32 accumulation + f32 epilogue): loose check
    out_bf16 = jax.block_until_ready(
        residual_block(x, a_hat, w_gcn, b_gcn, w_ln))
    assert jnp.allclose(out_bf16, ref, atol=5e-2, rtol=5e-2)

    print("KERNEL_OK")
</pallas_src>

<mosaic_0001>
module attributes {stable_mosaic.version = 11 : i64} {
  func.func @kernel(%arg0: i32, %arg1: i32, %arg2: memref<128x128xf32, #tpu.memory_space<vmem>>, %arg3: memref<128x128xf32, #tpu.memory_space<vmem>>, %arg4: memref<128x128xf32, #tpu.memory_space<vmem>>, %arg5: memref<1x128xf32, #tpu.memory_space<vmem>>, %arg6: memref<128x128xf32, #tpu.memory_space<vmem>>, %arg7: memref<128x128xf32, #tpu.memory_space<vmem>>) attributes {dimension_semantics = [#tpu.dimension_semantics<parallel>, #tpu.dimension_semantics<arbitrary>], iteration_bounds = array<i64: 1, 1>, scalar_prefetch = 0 : i64, scratch_operands = 0 : i64, tpu.core_type = #tpu.core_type<tc>, window_params = [{transform_indices = @transform_0, window_bounds = array<i64: 128, 128>}, {pipeline_mode = #tpu.pipeline_mode<synchronous>, transform_indices = @transform_1, window_bounds = array<i64: 128, 128>}, {pipeline_mode = #tpu.pipeline_mode<synchronous>, transform_indices = @transform_2, window_bounds = array<i64: 128, 128>}, {pipeline_mode = #tpu.pipeline_mode<synchronous>, transform_indices = @transform_3, window_bounds = array<i64: 1, 128>}, {pipeline_mode = #tpu.pipeline_mode<synchronous>, transform_indices = @transform_4, window_bounds = array<i64: 128, 128>}, {transform_indices = @transform_5, window_bounds = array<i64: 128, 128>}]} {
    %c0_i32 = arith.constant 0 : i32
    %0 = arith.cmpi eq, %arg1, %c0_i32 : i32
    %1 = arith.extui %0 : i1 to i32
    %c0_i32_0 = arith.constant 0 : i32
    %2 = arith.cmpi ne, %1, %c0_i32_0 : i32
    scf.if %2 {
      %cst_9 = arith.constant 0.000000e+00 : f32
      %15 = vector.broadcast %cst_9 : f32 to vector<128x128xf32>
      %c0_10 = arith.constant 0 : index
      %c0_11 = arith.constant 0 : index
      %16 = vector.load %arg7[%c0_10, %c0_11] : memref<128x128xf32, #tpu.memory_space<vmem>>, vector<128x128xf32>
      tpu.vector_store %arg7[%c0_10, %c0_11], %15 {strides = array<i32>} : memref<128x128xf32, #tpu.memory_space<vmem>>, vector<128x128xf32>,
    } else {
    }
    %c128_i32 = arith.constant 128 : i32
    %3 = arith.muli %arg1, %c128_i32 : i32
    %4 = tpu.assume_multiple %3, 128 : i32
    %5 = arith.index_cast %4 : i32 to index
    %c0 = arith.constant 0 : index
    %6 = vector.load %arg3[%5, %c0] : memref<128x128xf32, #tpu.memory_space<vmem>>, vector<128x128xf32>
    %c0_1 = arith.constant 0 : index
    %c0_2 = arith.constant 0 : index
    %7 = vector.load %arg7[%c0_1, %c0_2] : memref<128x128xf32, #tpu.memory_space<vmem>>, vector<128x128xf32>
    %c0_3 = arith.constant 0 : index
    %c0_4 = arith.constant 0 : index
    %8 = vector.load %arg2[%c0_3, %c0_4] : memref<128x128xf32, #tpu.memory_space<vmem>>, vector<128x128xf32>
    %cst = arith.constant dense<0.000000e+00> : vector<128x128xf32>
    %9 = tpu.matmul %8, %6, %cst {dimension_numbers = #tpu.dot_dimension_numbers<[1], [0], [0], [1], [0, 0, 1, 1], [], []>} : vector<128x128xf32>, vector<128x128xf32>, vector<128x128xf32> -> vector<128x128xf32>
    %10 = arith.addf %7, %9 : vector<128x128xf32>
    %c0_5 = arith.constant 0 : index
    %c0_6 = arith.constant 0 : index
    %11 = vector.load %arg7[%c0_5, %c0_6] : memref<128x128xf32, #tpu.memory_space<vmem>>, vector<128x128xf32>
    tpu.vector_store %arg7[%c0_5, %c0_6], %10 {strides = array<i32>} : memref<128x128xf32, #tpu.memory_space<vmem>>, vector<128x128xf32>,
    %c0_i32_7 = arith.constant 0 : i32
    %12 = arith.cmpi eq, %arg1, %c0_i32_7 : i32
    %13 = arith.extui %12 : i1 to i32
    %c0_i32_8 = arith.constant 0 : i32
    %14 = arith.cmpi ne, %13, %c0_i32_8 : i32
    scf.if %14 {
      %c0_9 = arith.constant 0 : index
      %c0_10 = arith.constant 0 : index
      %15 = vector.load %arg7[%c0_9, %c0_10] : memref<128x128xf32, #tpu.memory_space<vmem>>, vector<128x128xf32>
      %c0_11 = arith.constant 0 : index
      %c0_12 = arith.constant 0 : index
      %16 = vector.load %arg4[%c0_11, %c0_12] : memref<128x128xf32, #tpu.memory_space<vmem>>, vector<128x128xf32>
      %cst_13 = arith.constant dense<0.000000e+00> : vector<128x128xf32>
      %17 = tpu.matmul %15, %16, %cst_13 {dimension_numbers = #tpu.dot_dimension_numbers<[1], [0], [0], [1], [0, 0, 1, 1], [], []>} : vector<128x128xf32>, vector<128x128xf32>, vector<128x128xf32> -> vector<128x128xf32>
      %c0_14 = arith.constant 0 : index
      %c0_15 = arith.constant 0 : index
      %18 = vector.load %arg5[%c0_14, %c0_15] : memref<1x128xf32, #tpu.memory_space<vmem>>, vector<1x128xf32>
      %19 = vector.broadcast %18 : vector<1x128xf32> to vector<128x128xf32>
      %20 = arith.addf %17, %19 : vector<128x128xf32>
      %cst_16 = arith.constant 0.000000e+00 : f32
      %21 = vector.broadcast %cst_16 : f32 to vector<128x128xf32>
      %22 = arith.maximumf %20, %21 : vector<128x128xf32>
      %c0_17 = arith.constant 0 : index
      %c0_18 = arith.constant 0 : index
      %23 = vector.load %arg6[%c0_17, %c0_18] : memref<128x128xf32, #tpu.memory_space<vmem>>, vector<128x128xf32>
      %cst_19 = arith.constant dense<0.000000e+00> : vector<128x128xf32>
      %24 = tpu.matmul %22, %23, %cst_19 {dimension_numbers = #tpu.dot_dimension_numbers<[1], [0], [0], [1], [0, 0, 1, 1], [], []>} : vector<128x128xf32>, vector<128x128xf32>, vector<128x128xf32> -> vector<128x128xf32>
      %c128_i32_20 = arith.constant 128 : i32
      %25 = arith.muli %arg0, %c128_i32_20 : i32
      %26 = tpu.assume_multiple %25, 128 : i32
      %27 = arith.index_cast %26 : i32 to index
      %c0_21 = arith.constant 0 : index
      %28 = vector.load %arg3[%27, %c0_21] : memref<128x128xf32, #tpu.memory_space<vmem>>, vector<128x128xf32>
      %29 = arith.addf %24, %28 : vector<128x128xf32>
      %cst_22 = arith.constant 0.000000e+00 : f32
      %30 = vector.broadcast %cst_22 : f32 to vector<128x128xf32>
      %31 = arith.maximumf %29, %30 : vector<128x128xf32>
      %c0_23 = arith.constant 0 : index
      %c0_24 = arith.constant 0 : index
      %32 = vector.load %arg7[%c0_23, %c0_24] : memref<128x128xf32, #tpu.memory_space<vmem>>, vector<128x128xf32>
      tpu.vector_store %arg7[%c0_23, %c0_24], %31 {strides = array<i32>} : memref<128x128xf32, #tpu.memory_space<vmem>>, vector<128x128xf32>,
    } else {
    }
    return
  }
  func.func @transform_0(%arg0: i32, %arg1: i32) -> (i32, i32) {
    %c0_i32 = arith.constant 0 : i32
    return %arg0, %arg1 : i32, i32
  }
  func.func @transform_1(%arg0: i32, %arg1: i32) -> (i32, i32) {
    %c0_i32 = arith.constant 0 : i32
    %c0_i32_0 = arith.constant 0 : i32
    %c0_i32_1 = arith.constant 0 : i32
    return %c0_i32, %c0_i32_0 : i32, i32
  }
  func.func @transform_2(%arg0: i32, %arg1: i32) -> (i32, i32) {
    %c0_i32 = arith.constant 0 : i32
    %c0_i32_0 = arith.constant 0 : i32
    %c0_i32_1 = arith.constant 0 : i32
    return %c0_i32, %c0_i32_0 : i32, i32
  }
  func.func @transform_3(%arg0: i32, %arg1: i32) -> (i32, i32) {
    %c0_i32 = arith.constant 0 : i32
    %c0_i32_0 = arith.constant 0 : i32
    %c0_i32_1 = arith.constant 0 : i32
    return %c0_i32, %c0_i32_0 : i32, i32
  }
  func.func @transform_4(%arg0: i32, %arg1: i32) -> (i32, i32) {
    %c0_i32 = arith.constant 0 : i32
    %c0_i32_0 = arith.constant 0 : i32
    %c0_i32_1 = arith.constant 0 : i32
    return %c0_i32, %c0_i32_0 : i32, i32
  }
  func.func @transform_5(%arg0: i32, %arg1: i32) -> (i32, i32) {
    %c0_i32 = arith.constant 0 : i32
    %c0_i32_0 = arith.constant 0 : i32
    return %arg0, %c0_i32 : i32, i32
  }
}

</mosaic_0001>

<bundles_post_ra>
// kernel: tpu_custom_call.1
= control target key start
LH: loop header
LB: loop body
LE: loop exit
PB: predicated region body
PF: predicated region fallthrough
CT: control target
= control target key end

     0   :  { %10 = vsyncpa [#allocation3], 0  ;;  %s1452_s0 = inlined_call_operand.hbm [shape: f32[128,128], index: 0, kind: input, shape index: {}]   ;;  %s1453_s1 = inlined_call_operand.hbm [shape: f32[128,128], index: 1, kind: input, shape index: {}]   ;;  %s1454_s2 = inlined_call_operand.hbm [shape: f32[128,128], index: 2, kind: input, shape index: {}]   ;;  %s1455_s3 = inlined_call_operand.vmem [shape: f32[1,128], index: 3, kind: input, shape index: {}]   ;;  %s1456_s4 = inlined_call_operand.hbm [shape: f32[128,128], index: 4, kind: input, shape index: {}]   ;;  %s1457_s5 = inlined_call_operand.hbm [shape: f32[128,128], index: 5, kind: output, shape index: {}]  }
   0x1   :  { %11 = vsyncpa [#allocation6], 0 }
   0x2   :  { %12 = vsyncpa [#allocation9], 0 }
   0x3   :  { %13 = vsyncpa [#allocation4], 0  ;;  %s1259_s18 = smov [#allocation5]   ;;  %s1260_s20 = smov [#allocation2]  }
   0x4   :  { %s31_s19 = sshll.u32 %s1259_s18, 4  ;;  %s19_s21 = sshll.u32 %s1260_s20, 4  ;;  %s32_s19 = int_to_ptr.vmem [resolvable:$true] %s31_s19  ;;  %s1296_s21 = int_to_ptr.vmem [resolvable:$true] %s19_s21 }
   0x5   :  { %s1141_s24 = scalar_lea.hbm %s1453_s1, 2048 }
   0x6   :  { %p1142_p0 = scmp.ne.s32.totalorder %s1453_s1, %s1141_s24  ;;  %p1145_p1 = scmp.lt.u32.totalorder %s1141_s24, %s1453_s1 }
   0x8   :  { %p1147_p2 = pnand %p1145_p1, %p1142_p0 }
   0xa   :  { %1150 = shalt.err (!%p1147_p2)
}
   0xb   :  { %s1151_s29 = scalar_lea.vmem %s32_s19, 2048  ;;  %p1156_p4 = scmp.lt.s32.totalorder %s32_s19, %s32_s19 }
   0xc   :  { %p1152_p3 = scmp.ne.s32.totalorder %s32_s19, %s1151_s29  ;;  %p1157_p5 = scmp.lt.s32.totalorder %s1151_s29, %s1151_s29 }
   0xe   :  { %p1158_p6 = por %p1157_p5, %p1156_p4 }
  0x10   :  { %p1159_p7 = pnand %p1158_p6, %p1152_p3 }
  0x12   :  { %1162 = shalt.err (!%p1159_p7)
}
  0x13   :  { %s1261_s30 = smov 128   ;;  %s1262_s6 = smov 8  }
  0x14   :  { %37 = dma.hbm_to_vmem [thread:$0]  %s1453_s1, 2048, %s32_s19, [#allocation6], %s1261_s30, %s1261_s30, %s1262_s6  }
  0x15   :  { %s1163_s11 = scalar_lea.hbm %s1452_s0, 2048 }
  0x16   :  { %p1164_p8 = scmp.ne.s32.totalorder %s1452_s0, %s1163_s11  ;;  %p1167_p9 = scmp.lt.u32.totalorder %s1163_s11, %s1452_s0 }
  0x18   :  { %p1169_p10 = pnand %p1167_p9, %p1164_p8 }
  0x1a   :  { %1172 = shalt.err (!%p1169_p10)
}
  0x1b   :  { %s1173_s16 = scalar_lea.vmem %s1296_s21, 2048  ;;  %p1178_p12 = scmp.lt.s32.totalorder %s1296_s21, %s1296_s21 }
  0x1c   :  { %p1174_p11 = scmp.ne.s32.totalorder %s1296_s21, %s1173_s16  ;;  %p1179_p13 = scmp.lt.s32.totalorder %s1173_s16, %s1173_s16 }
  0x1e   :  { %p1180_p0 = por %p1179_p13, %p1178_p12 }
  0x20   :  { %p1181_p1 = pnand %p1180_p0, %p1174_p11 }
  0x22   :  { %1184 = shalt.err (!%p1181_p1)
}
  0x23   :  { %25 = dma.hbm_to_vmem [thread:$0]  %s1452_s0, 2048, %s1296_s21, [#allocation3], %s1261_s30, %s1261_s30, %s1262_s6  }
  0x24   :  { %s1263_s18 = smov [#allocation7]   ;;  %s1264_s20 = smov [#allocation8]  }
  0x25   :  { %s43_s19 = sshll.u32 %s1263_s18, 4  ;;  %s57_s22 = sshll.u32 %s1264_s20, 4  ;;  %s44_s19 = int_to_ptr.vmem [resolvable:$true] %s43_s19  ;;  %s1333_s22 = int_to_ptr.vmem [resolvable:$true] %s57_s22 }
  0x26   :  { %s1185_s25 = scalar_lea.hbm %s1454_s2, 2048 }
  0x27   :  { %p1186_p2 = scmp.ne.s32.totalorder %s1454_s2, %s1185_s25  ;;  %p1189_p3 = scmp.lt.u32.totalorder %s1185_s25, %s1454_s2 }
  0x29   :  { %p1191_p4 = pnand %p1189_p3, %p1186_p2 }
  0x2b   :  { %1194 = shalt.err (!%p1191_p4)
}
  0x2c   :  { %s1195_s0 = scalar_lea.vmem %s44_s19, 2048  ;;  %p1200_p6 = scmp.lt.s32.totalorder %s44_s19, %s44_s19 }
  0x2d   :  { %p1196_p5 = scmp.ne.s32.totalorder %s44_s19, %s1195_s0  ;;  %p1201_p7 = scmp.lt.s32.totalorder %s1195_s0, %s1195_s0 }
  0x2f   :  { %p1202_p8 = por %p1201_p7, %p1200_p6 }
  0x31   :  { %p1203_p9 = pnand %p1202_p8, %p1196_p5 }
  0x33   :  { %1206 = shalt.err (!%p1203_p9)
}
  0x34   :  { %49 = dma.hbm_to_vmem [thread:$0]  %s1454_s2, 2048, %s44_s19, [#allocation6], %s1261_s30, %s1261_s30, %s1262_s6  }
  0x35   :  { %s1207_s10 = scalar_lea.hbm %s1456_s4, 2048 }
  0x36   :  { %p1208_p10 = scmp.ne.s32.totalorder %s1456_s4, %s1207_s10  ;;  %p1211_p11 = scmp.lt.u32.totalorder %s1207_s10, %s1456_s4 }
  0x38   :  { %p1213_p12 = pnand %p1211_p11, %p1208_p10 }
  0x3a   :  { %1216 = shalt.err (!%p1213_p12)
}
  0x3b   :  { %s1217_s15 = scalar_lea.vmem %s1333_s22, 2048  ;;  %p1222_p0 = scmp.lt.s32.totalorder %s1333_s22, %s1333_s22 }
  0x3c   :  { %p1218_p13 = scmp.ne.s32.totalorder %s1333_s22, %s1217_s15  ;;  %p1223_p1 = scmp.lt.s32.totalorder %s1217_s15, %s1217_s15 }
  0x3e   :  { %p1224_p2 = por %p1223_p1, %p1222_p0 }
  0x40   :  { %p1225_p3 = pnand %p1224_p2, %p1218_p13 }
  0x42   :  { %1228 = shalt.err (!%p1225_p3)
}
  0x43   :  { %63 = dma.hbm_to_vmem [thread:$0]  %s1456_s4, 2048, %s1333_s22, [#allocation9], %s1261_s30, %s1261_s30, %s1262_s6  }
  0x44   :  { %1251 = dma.done.wait [#allocation3], 2048  }
  0x45   :  { %1252 = vsyncadd [#allocation3], 4294965248 }
  0x46   :  { %1253 = dma.done.wait [#allocation6], 4096  }
  0x47   :  { %1254 = vsyncadd [#allocation6], 4294963200 }
  0x48   :  { %1255 = dma.done.wait [#allocation9], 2048  }
  0x49   :  { %1256 = vsyncadd [#allocation9], 4294965248  ;;  %v1370_v0 = vld [vmem:[#allocation5] sm:$0xff]  ;;  %v1372_v1 = vld [vmem:[#allocation5 + $0x8] sm:$0xff] }
  0x4a   :  { %v1374_v2 = vld [vmem:[#allocation5 + $0x10] sm:$0xff]  ;;  %v1021_v3 = vpack.c.bf16 %v1372_v1, %v1370_v0  ;;  %v1378_v4 = vld [vmem:[#allocation5 + $0x18] sm:$0xff]  ;;  %v1382_v6 = vld [vmem:[#allocation5 + $0x20] sm:$0xff] }
  0x4b   :  { %v1025_v5 = vpack.c.bf16 %v1378_v4, %v1374_v2  ;;  %v1384_v7 = vld [vmem:[#allocation5 + $0x28] sm:$0xff]  ;;  %v130_v9 = vld [vmem:[#allocation2] sm:$0xff]  ;;  %v1388_v10 = vld [vmem:[#allocation5 + $0x30] sm:$0xff] }
  0x4c   :  { %1022 = vmatprep.subr.bf16.mxu0 %v1021_v3  ;;  %v1029_v8 = vpack.c.bf16 %v1384_v7, %v1382_v6  ;;  %v1390_v11 = vld [vmem:[#allocation5 + $0x38] sm:$0xff]  ;;  %885 = vmatprep.mubr.f32.mxu0 %v130_v9  ;;  %v1394_v13 = vld [vmem:[#allocation5 + $0x40] sm:$0xff]  ;;  %v1396_v14 = vld [vmem:[#allocation5 + $0x48] sm:$0xff] }
  0x4d   :  { %1024 = vmatpush3.bf16.msra.mxu0 %v1021_v3  ;;  %v1033_v12 = vpack.c.bf16 %v1390_v11, %v1388_v10  ;;  %v342_v15 = vld [vmem:[#allocation7] sm:$0xff]  ;;  %v343_v16 = vld [vmem:[#allocation7 + $0x8] sm:$0xff]  ;;  %v344_v17 = vld [vmem:[#allocation7 + $0x10] sm:$0xff]  ;;  %v1037_v21 = vpack.c.bf16 %v1396_v14, %v1394_v13 }
  0x4e   :  { %1026 = vmatprep.subr.bf16.mxu0 %v1025_v5  ;;  %v345_v18 = vld [vmem:[#allocation7 + $0x18] sm:$0xff]  ;;  %v1053_v19 = vpack.c.bf16 %v343_v16, %v342_v15  ;;  %v346_v22 = vld [vmem:[#allocation7 + $0x20] sm:$0xff]  ;;  %v347_v23 = vld [vmem:[#allocation7 + $0x28] sm:$0xff] }
  0x4f   :  { %v1057_v20 = vpack.c.bf16 %v345_v18, %v344_v17  ;;  %v1400_v24 = vld [vmem:[#allocation5 + $0x50] sm:$0xff]  ;;  %v1402_v25 = vld [vmem:[#allocation5 + $0x58] sm:$0xff]  ;;  %v1061_v26 = vpack.c.bf16 %v347_v23, %v346_v22  ;;  %v1406_v30 = vld [vmem:[#allocation5 + $0x60] sm:$0xff] }
  0x50   :  { %1054 = vmatprep.subr.bf16.mxu1 %v1053_v19  ;;  %v1041_v27 = vpack.c.bf16 %v1402_v25, %v1400_v24  ;;  %v348_v28 = vld [vmem:[#allocation7 + $0x30] sm:$0xff]  ;;  %v349_v29 = vld [vmem:[#allocation7 + $0x38] sm:$0xff]  ;;  %v1408_v31 = vld [vmem:[#allocation5 + $0x68] sm:$0xff] }
  0x51   :  { %1028 = vmatpush3.bf16.msra.mxu0 %v1025_v5  ;;  %1056 = vmatpush3.bf16.msra.mxu1 %v1053_v19  ;;  %v1065_v32 = vpack.c.bf16 %v349_v29, %v348_v28  ;;  %v1045_v33 = vpack.c.bf16 %v1408_v31, %v1406_v30  ;;  %v350_v34 = vld [vmem:[#allocation7 + $0x40] sm:$0xff]  ;;  %v351_v35 = vld [vmem:[#allocation7 + $0x48] sm:$0xff]  ;;  %v1412_v36 = vld [vmem:[#allocation5 + $0x70] sm:$0xff] }
  0x52   :  { %1030 = vmatprep.subr.bf16.mxu0 %v1029_v8  ;;  %1058 = vmatprep.subr.bf16.mxu1 %v1057_v20  ;;  %v1414_v37 = vld [vmem:[#allocation5 + $0x78] sm:$0xff]  ;;  %v1069_v38 = vpack.c.bf16 %v351_v35, %v350_v34  ;;  %v131_v40 = vld [vmem:[#allocation2 + $0x8] sm:$0xff]  ;;  %v132_v41 = vld [vmem:[#allocation2 + $0x10] sm:$0xff] }
  0x53   :  { %v1049_v39 = vpack.c.bf16 %v1414_v37, %v1412_v36  ;;  %v133_v42 = vld [vmem:[#allocation2 + $0x18] sm:$0xff]  ;;  %v134_v43 = vld [vmem:[#allocation2 + $0x20] sm:$0xff]  ;;  %v135_v44 = vld [vmem:[#allocation2 + $0x28] sm:$0xff] }
  0x54   :  { %v136_v45 = vld [vmem:[#allocation2 + $0x30] sm:$0xff]  ;;  %v137_v46 = vld [vmem:[#allocation2 + $0x38] sm:$0xff]  ;;  %v138_v47 = vld [vmem:[#allocation2 + $0x40] sm:$0xff] }
  0x55   :  { %1032 = vmatpush3.bf16.msra.mxu0 %v1029_v8  ;;  %1060 = vmatpush3.bf16.msra.mxu1 %v1057_v20  ;;  %v139_v48 = vld [vmem:[#allocation2 + $0x48] sm:$0xff]  ;;  %v140_v49 = vld [vmem:[#allocation2 + $0x50] sm:$0xff]  ;;  %v141_v50 = vld [vmem:[#allocation2 + $0x58] sm:$0xff] }
  0x56   :  { %1034 = vmatprep.subr.bf16.mxu0 %v1033_v12  ;;  %1062 = vmatprep.subr.bf16.mxu1 %v1061_v26  ;;  %v142_v51 = vld [vmem:[#allocation2 + $0x60] sm:$0xff]  ;;  %v143_v52 = vld [vmem:[#allocation2 + $0x68] sm:$0xff]  ;;  %v144_v53 = vld [vmem:[#allocation2 + $0x70] sm:$0xff] }
  0x57   :  { %v145_v54 = vld [vmem:[#allocation2 + $0x78] sm:$0xff]  ;;  %v352_v55 = vld [vmem:[#allocation7 + $0x50] sm:$0xff]  ;;  %v354_v58 = vld [vmem:[#allocation7 + $0x60] sm:$0xff] }
  0x58   :  { %v353_v56 = vld [vmem:[#allocation7 + $0x58] sm:$0xff]  ;;  %v355_v59 = vld [vmem:[#allocation7 + $0x68] sm:$0xff]  ;;  %v356_v61 = vld [vmem:[#allocation7 + $0x70] sm:$0xff] }
  0x59   :  { %1036 = vmatpush3.bf16.msra.mxu0 %v1033_v12  ;;  %1064 = vmatpush3.bf16.msra.mxu1 %v1061_v26  ;;  %v1073_v57 = vpack.c.bf16 %v353_v56, %v352_v55  ;;  %v1077_v60 = vpack.c.bf16 %v355_v59, %v354_v58  ;;  %v357_v62 = vld [vmem:[#allocation7 + $0x78] sm:$0xff]  ;;  %v526_v3 = vld [vmem:[#allocation8] sm:$0xff]  ;;  %v527_v5 = vld [vmem:[#allocation8 + $0x8] sm:$0xff] }
  0x5a   :  { %1038 = vmatprep.subr.bf16.mxu0 %v1037_v21  ;;  %1066 = vmatprep.subr.bf16.mxu1 %v1065_v32  ;;  %v1081_v63 = vpack.c.bf16 %v357_v62, %v356_v61  ;;  %v528_v8 = vld [vmem:[#allocation8 + $0x10] sm:$0xff]  ;;  %v1085_v9 = vpack.c.bf16 %v527_v5, %v526_v3  ;;  %v529_v12 = vld [vmem:[#allocation8 + $0x18] sm:$0xff]  ;;  %v530_v16 = vld [vmem:[#allocation8 + $0x20] sm:$0xff] }
  0x5b   :  { %v1089_v15 = vpack.c.bf16 %v529_v12, %v528_v8  ;;  %v531_v17 = vld [vmem:[#allocation8 + $0x28] sm:$0xff]  ;;  %v532_v19 = vld [vmem:[#allocation8 + $0x30] sm:$0xff]  ;;  %v533_v20 = vld [vmem:[#allocation8 + $0x38] sm:$0xff] }
  0x5c   :  { %v1093_v18 = vpack.c.bf16 %v531_v17, %v530_v16  ;;  %v534_v22 = vld [vmem:[#allocation8 + $0x40] sm:$0xff]  ;;  %v535_v23 = vld [vmem:[#allocation8 + $0x48] sm:$0xff]  ;;  %v537_v28 = vld [vmem:[#allocation8 + $0x58] sm:$0xff] }
  0x5d   :  { %1040 = vmatpush3.bf16.msra.mxu0 %v1037_v21  ;;  %1068 = vmatpush3.bf16.msra.mxu1 %v1065_v32  ;;  %v1097_v21 = vpack.c.bf16 %v533_v20, %v532_v19  ;;  %v1101_v26 = vpack.c.bf16 %v535_v23, %v534_v22  ;;  %v538_v32 = vld [vmem:[#allocation8 + $0x60] sm:$0xff] }
  0x5e   :  { %1042 = vmatprep.subr.bf16.mxu0 %v1041_v27  ;;  %1070 = vmatprep.subr.bf16.mxu1 %v1069_v38  ;;  %v756_v56 = vld [vmem:[%s1455_s3] ss:$0 sm:$0xff]  ;;  %s1265_s3 = smov [#allocation10]  }
  0x5f   :  { %s742_s17 = sshll.u32 %s1265_s3, 4  ;;  %s743_s17 = int_to_ptr.vmem [resolvable:$true] %s742_s17 }
  0x60   :  { %s1229_s18 = scalar_lea.vmem %s743_s17, 2048  ;;  %p1234_p5 = scmp.lt.s32.totalorder %s743_s17, %s743_s17 }
  0x61   :  { %1044 = vmatpush3.bf16.msra.mxu0 %v1041_v27  ;;  %1072 = vmatpush3.bf16.msra.mxu1 %v1069_v38  ;;  %v536_v27 = vld [vmem:[#allocation8 + $0x50] sm:$0xff]  ;;  %p1230_p4 = scmp.ne.s32.totalorder %s743_s17, %s1229_s18  ;;  %p1235_p6 = scmp.lt.s32.totalorder %s1229_s18, %s1229_s18 }
  0x62   :  { %1046 = vmatprep.subr.bf16.mxu0 %v1045_v33  ;;  %1074 = vmatprep.subr.bf16.mxu1 %v1073_v57  ;;  %v1105_v29 = vpack.c.bf16 %v537_v28, %v536_v27 }
  0x63   :  { %p1236_p7 = por %p1235_p6, %p1234_p5 }
  0x65   :  { %1048 = vmatpush3.bf16.msra.mxu0 %v1045_v33  ;;  %1076 = vmatpush3.bf16.msra.mxu1 %v1073_v57  ;;  %v539_v33 = vld [vmem:[#allocation8 + $0x68] sm:$0xff]  ;;  %p1237_p8 = pnand %p1236_p7, %p1230_p4 }
  0x66   :  { %1050 = vmatprep.subr.bf16.mxu0 %v1049_v39  ;;  %1078 = vmatprep.subr.bf16.mxu1 %v1077_v60  ;;  %v1109_v34 = vpack.c.bf16 %v539_v33, %v538_v32 }
  0x69   :  { %1052 = vmatpush3.bf16.msra.mxu0 %v1049_v39  ;;  %1080 = vmatpush3.bf16.msra.mxu1 %v1077_v60 }
  0x6a   :  { %1082 = vmatprep.subr.bf16.mxu1 %v1081_v63  ;;  %1086 = vmatprep.subr.bf16.mxu0 %v1085_v9 }
  0x6c   :  { %886 = vmatmul.mubr.f32.vlgmr.msra.gmra.mrb[0].mxu0 %v131_v40 }
  0x6d   :  { %888 = vmatprep.mubr.f32.mxu0 %v132_v41  ;;  %1084 = vmatpush3.bf16.msra.mxu1 %v1081_v63 }
  0x6e   :  { %1117 = vmatprep.subr.bf16.mxu1 %v1085_v9  ;;  %1088 = vmatpush3.bf16.msra.mxu0 %v1085_v9 }
  0x6f   :  { %1090 = vmatprep.subr.bf16.mxu0 %v1089_v15 }
  0x70   :  { %889 = vmatmul.mubr.f32.gmra.mrb[2].mxu0 %v133_v42 }
  0x71   :  { %891 = vmatprep.mubr.f32.mxu0 %v134_v43 }
  0x72   :  { %1092 = vmatpush3.bf16.msra.mxu0 %v1089_v15 }
  0x73   :  { %1094 = vmatprep.subr.bf16.mxu0 %v1093_v18 }
  0x74   :  { %892 = vmatmul.mubr.f32.gmra.mrb[4].mxu0 %v135_v44 }
  0x75   :  { %894 = vmatprep.mubr.f32.mxu0 %v136_v45 }
  0x76   :  { %1096 = vmatpush3.bf16.msra.mxu0 %v1093_v18 }
  0x77   :  { %1098 = vmatprep.subr.bf16.mxu0 %v1097_v21 }
  0x78   :  { %895 = vmatmul.mubr.f32.gmra.mrb[6].mxu0 %v137_v46 }
  0x79   :  { %897 = vmatprep.mubr.f32.mxu0 %v138_v47 }
  0x7a   :  { %1100 = vmatpush3.bf16.msra.mxu0 %v1097_v21 }
  0x7b   :  { %1102 = vmatprep.subr.bf16.mxu0 %v1101_v26 }
  0x7c   :  { %898 = vmatmul.mubr.f32.gmra.mrb[8].mxu0 %v139_v48 }
  0x7d   :  { %900 = vmatprep.mubr.f32.mxu0 %v140_v49 }
  0x7e   :  { %1104 = vmatpush3.bf16.msra.mxu0 %v1101_v26 }
  0x7f   :  { %1106 = vmatprep.subr.bf16.mxu0 %v1105_v29 }
  0x80   :  { %901 = vmatmul.mubr.f32.gmra.mrb[10].mxu0 %v141_v50 }
  0x81   :  { %903 = vmatprep.mubr.f32.mxu0 %v142_v51 }
  0x82   :  { %1108 = vmatpush3.bf16.msra.mxu0 %v1105_v29 }
  0x83   :  { %1110 = vmatprep.subr.bf16.mxu0 %v1109_v34 }
  0x84   :  { %904 = vmatmul.mubr.f32.gmra.mrb[12].mxu0 %v143_v52 }
  0x85   :  { %906 = vmatprep.mubr.f32.mxu0 %v144_v53  ;;  %v540_v53 = vld [vmem:[#allocation8 + $0x70] sm:$0xff] }
  0x86   :  { %1112 = vmatpush3.bf16.msra.mxu0 %v1109_v34 }
  0x88   :  { %907 = vmatmul.mubr.f32.gmra.mrb[14].mxu0 %v145_v54  ;;  %v541_v54 = vld [vmem:[#allocation8 + $0x78] sm:$0xff] }
  0x89   :  { %v1113_v55 = vpack.c.bf16 %v541_v54, %v540_v53 }
  0x8b   :  { %1114 = vmatprep.subr.bf16.mxu0 %v1113_v55 }
  0x8c   :  { %1116 = vmatpush3.bf16.msra.mxu0 %v1113_v55 }
 0x13f   :  { %v887_v35 = vpop.f32.mrb[0].mxu0 }
 0x140   :  { %v212_v38 = vpop.f32.mrb[1].mxu0 }
 0x141   :  { %941 = vmatprep.mubr.f32.mxu1 %v212_v38 }
 0x142   :  { %942 = vmatmul.mubr.f32.vlgmr.msra.gmra.mrb[0].mxu1 %v887_v35 }
 0x143   :  { %v890_v39 = vpop.f32.mrb[2].mxu0  ;;  %1125 = vmatpush3.bf16.msra.mxu1 %v1085_v9 }
 0x144   :  { %v222_v40 = vpop.f32.mrb[3].mxu0  ;;  %1118 = vmatprep.subr.bf16.mxu1 %v1089_v15 }
 0x145   :  { %944 = vmatprep.mubr.f32.mxu1 %v222_v40 }
 0x146   :  { %945 = vmatmul.mubr.f32.gmra.mrb[2].mxu1 %v890_v39 }
 0x147   :  { %v893_v41 = vpop.f32.mrb[4].mxu0  ;;  %1126 = vmatpush3.bf16.msra.mxu1 %v1089_v15 }
 0x148   :  { %v232_v42 = vpop.f32.mrb[5].mxu0  ;;  %1119 = vmatprep.subr.bf16.mxu1 %v1093_v18 }
 0x149   :  { %947 = vmatprep.mubr.f32.mxu1 %v232_v42 }
 0x14a   :  { %948 = vmatmul.mubr.f32.gmra.mrb[4].mxu1 %v893_v41 }
 0x14b   :  { %v896_v43 = vpop.f32.mrb[6].mxu0  ;;  %1127 = vmatpush3.bf16.msra.mxu1 %v1093_v18 }
 0x14c   :  { %v242_v44 = vpop.f32.mrb[7].mxu0  ;;  %1120 = vmatprep.subr.bf16.mxu1 %v1097_v21 }
 0x14d   :  { %950 = vmatprep.mubr.f32.mxu1 %v242_v44 }
 0x14e   :  { %951 = vmatmul.mubr.f32.gmra.mrb[6].mxu1 %v896_v43 }
 0x14f   :  { %v899_v45 = vpop.f32.mrb[8].mxu0  ;;  %1128 = vmatpush3.bf16.msra.mxu1 %v1097_v21 }
 0x150   :  { %v252_v46 = vpop.f32.mrb[9].mxu0  ;;  %1121 = vmatprep.subr.bf16.mxu1 %v1101_v26 }
 0x151   :  { %953 = vmatprep.mubr.f32.mxu1 %v252_v46 }
 0x152   :  { %954 = vmatmul.mubr.f32.gmra.mrb[8].mxu1 %v899_v45 }
 0x153   :  { %v902_v47 = vpop.f32.mrb[10].mxu0  ;;  %1129 = vmatpush3.bf16.msra.mxu1 %v1101_v26 }
 0x154   :  { %v262_v48 = vpop.f32.mrb[11].mxu0  ;;  %1122 = vmatprep.subr.bf16.mxu1 %v1105_v29 }
 0x155   :  { %956 = vmatprep.mubr.f32.mxu1 %v262_v48 }
 0x156   :  { %957 = vmatmul.mubr.f32.gmra.mrb[10].mxu1 %v902_v47 }
 0x157   :  { %v905_v49 = vpop.f32.mrb[12].mxu0  ;;  %1130 = vmatpush3.bf16.msra.mxu1 %v1105_v29 }
 0x158   :  { %v272_v50 = vpop.f32.mrb[13].mxu0  ;;  %1123 = vmatprep.subr.bf16.mxu1 %v1109_v34 }
 0x159   :  { %959 = vmatprep.mubr.f32.mxu1 %v272_v50 }
 0x15a   :  { %960 = vmatmul.mubr.f32.gmra.mrb[12].mxu1 %v905_v49 }
 0x15b   :  { %v908_v51 = vpop.f32.mrb[14].mxu0  ;;  %1131 = vmatpush3.bf16.msra.mxu1 %v1109_v34 }
 0x15c   :  { %v282_v52 = vpop.f32.mrb[15].mxu0  ;;  %1124 = vmatprep.subr.bf16.mxu1 %v1113_v55 }
 0x15d   :  { %962 = vmatprep.mubr.f32.mxu1 %v282_v52 }
 0x15e   :  { %963 = vmatmul.mubr.f32.gmra.mrb[14].mxu1 %v908_v51 }
 0x15f   :  { %1132 = vmatpush3.bf16.msra.mxu1 %v1113_v55 }
 0x215   :  { %v943_v57 = vpop.f32.mrb[0].mxu1 }
 0x216   :  { %v437_v58 = vadd.f32 %v943_v57, %v756_v56  ;;  %v431_v59 = vpop.f32.mrb[1].mxu1 }
 0x217   :  { %v432_v60 = vadd.f32 %v756_v56, %v431_v59 }
 0x218   :  { %v511_v63 = vmax.f32 %v437_v58, 0.0 }
 0x219   :  { %v510_v61 = vmax.f32 %v432_v60, 0.0  ;;  %v946_v62 = vpop.f32.mrb[2].mxu1 }
 0x21a   :  { %v447_v3 = vadd.f32 %v946_v62, %v756_v56  ;;  %v441_v5 = vpop.f32.mrb[3].mxu1 }
 0x21b   :  { %v442_v8 = vadd.f32 %v756_v56, %v441_v5  ;;  %997 = vmatprep.mubr.f32.mxu0 %v510_v61 }
 0x21c   :  { %998 = vmatmul.mubr.f32.vlgmr.msra.gmra.mrb[16].mxu0 %v511_v63  ;;  %v513_v15 = vmax.f32 %v447_v3, 0.0 }
 0x21d   :  { %v512_v9 = vmax.f32 %v442_v8, 0.0  ;;  %v949_v12 = vpop.f32.mrb[4].mxu1 }
 0x21e   :  { %v457_v16 = vadd.f32 %v949_v12, %v756_v56  ;;  %v451_v17 = vpop.f32.mrb[5].mxu1 }
 0x21f   :  { %v452_v18 = vadd.f32 %v756_v56, %v451_v17  ;;  %1000 = vmatprep.mubr.f32.mxu0 %v512_v9 }
 0x220   :  { %1001 = vmatmul.mubr.f32.gmra.mrb[18].mxu0 %v513_v15  ;;  %v515_v21 = vmax.f32 %v457_v16, 0.0 }
 0x221   :  { %v514_v19 = vmax.f32 %v452_v18, 0.0  ;;  %v952_v20 = vpop.f32.mrb[6].mxu1 }
 0x222   :  { %v467_v22 = vadd.f32 %v952_v20, %v756_v56  ;;  %v461_v23 = vpop.f32.mrb[7].mxu1 }
 0x223   :  { %v462_v26 = vadd.f32 %v756_v56, %v461_v23  ;;  %1003 = vmatprep.mubr.f32.mxu0 %v514_v19 }
 0x224   :  { %1004 = vmatmul.mubr.f32.gmra.mrb[20].mxu0 %v515_v21  ;;  %v517_v29 = vmax.f32 %v467_v22, 0.0 }
 0x225   :  { %v516_v27 = vmax.f32 %v462_v26, 0.0  ;;  %v955_v28 = vpop.f32.mrb[8].mxu1 }
 0x226   :  { %v477_v32 = vadd.f32 %v955_v28, %v756_v56  ;;  %v471_v33 = vpop.f32.mrb[9].mxu1 }
 0x227   :  { %v472_v34 = vadd.f32 %v756_v56, %v471_v33  ;;  %1006 = vmatprep.mubr.f32.mxu0 %v516_v27 }
 0x228   :  { %1007 = vmatmul.mubr.f32.gmra.mrb[22].mxu0 %v517_v29  ;;  %v519_v39 = vmax.f32 %v477_v32, 0.0 }
 0x229   :  { %v518_v35 = vmax.f32 %v472_v34, 0.0  ;;  %v958_v38 = vpop.f32.mrb[10].mxu1 }
 0x22a   :  { %v487_v40 = vadd.f32 %v958_v38, %v756_v56  ;;  %v481_v41 = vpop.f32.mrb[11].mxu1 }
 0x22b   :  { %v482_v42 = vadd.f32 %v756_v56, %v481_v41  ;;  %1009 = vmatprep.mubr.f32.mxu1 %v518_v35 }
 0x22c   :  { %1010 = vmatmul.mubr.f32.vlgmr.msra.gmra.mrb[16].mxu1 %v519_v39  ;;  %v521_v45 = vmax.f32 %v487_v40, 0.0 }
 0x22d   :  { %v520_v43 = vmax.f32 %v482_v42, 0.0  ;;  %v961_v44 = vpop.f32.mrb[12].mxu1 }
 0x22e   :  { %v497_v46 = vadd.f32 %v961_v44, %v756_v56  ;;  %v491_v47 = vpop.f32.mrb[13].mxu1 }
 0x22f   :  { %v492_v48 = vadd.f32 %v756_v56, %v491_v47  ;;  %1012 = vmatprep.mubr.f32.mxu1 %v520_v43 }
 0x230   :  { %1013 = vmatmul.mubr.f32.gmra.mrb[18].mxu1 %v521_v45  ;;  %v523_v51 = vmax.f32 %v497_v46, 0.0 }
 0x231   :  { %v522_v49 = vmax.f32 %v492_v48, 0.0  ;;  %v964_v50 = vpop.f32.mrb[14].mxu1 }
 0x232   :  { %v507_v52 = vadd.f32 %v964_v50, %v756_v56  ;;  %v501_v53 = vpop.f32.mrb[15].mxu1 }
 0x233   :  { %v502_v54 = vadd.f32 %v756_v56, %v501_v53  ;;  %1015 = vmatprep.mubr.f32.mxu1 %v522_v49 }
 0x234   :  { %1016 = vmatmul.mubr.f32.gmra.mrb[20].mxu1 %v523_v51  ;;  %v525_v57 = vmax.f32 %v507_v52, 0.0 }
 0x235   :  { %v524_v55 = vmax.f32 %v502_v54, 0.0 }
 0x237   :  { %1018 = vmatprep.mubr.f32.mxu1 %v524_v55 }
 0x238   :  { %1019 = vmatmul.mubr.f32.gmra.mrb[22].mxu1 %v525_v57 }
 0x2ef   :  { %v999_v58 = vpop.f32.mrb[16].mxu0 }
 0x2f0   :  { %v632_v59 = vadd.f32 %v999_v58, %v1372_v1  ;;  %v626_v60 = vpop.f32.mrb[17].mxu0 }
 0x2f1   :  { %v627_v61 = vadd.f32 %v626_v60, %v1370_v0 }
 0x2f2   :  { %v706_v62 = vmax.f32 %v632_v59, 0.0 }
 0x2f3   :  { %v705_v63 = vmax.f32 %v627_v61, 0.0  ;;  %v1002_v3 = vpop.f32.mrb[18].mxu0 }
 0x2f4   :  { %722 = vst [vmem:[#allocation10 + $0x8] sm:$0xff] %v706_v62  ;;  %v642_v5 = vadd.f32 %v1002_v3, %v1378_v4  ;;  %v636_v8 = vpop.f32.mrb[19].mxu0 }
 0x2f5   :  { %721 = vst [vmem:[#allocation10] sm:$0xff] %v705_v63  ;;  %v637_v56 = vadd.f32 %v636_v8, %v1374_v2 }
 0x2f6   :  { %v708_v9 = vmax.f32 %v642_v5, 0.0 }
 0x2f7   :  { %v707_v12 = vmax.f32 %v637_v56, 0.0  ;;  %v1005_v15 = vpop.f32.mrb[20].mxu0 }
 0x2f8   :  { %724 = vst [vmem:[#allocation10 + $0x18] sm:$0xff] %v708_v9  ;;  %v652_v16 = vadd.f32 %v1005_v15, %v1384_v7  ;;  %v646_v1 = vpop.f32.mrb[21].mxu0 }
 0x2f9   :  { %723 = vst [vmem:[#allocation10 + $0x10] sm:$0xff] %v707_v12  ;;  %v647_v0 = vadd.f32 %v646_v1, %v1382_v6 }
 0x2fa   :  { %v710_v17 = vmax.f32 %v652_v16, 0.0 }
 0x2fb   :  { %v709_v18 = vmax.f32 %v647_v0, 0.0  ;;  %v1008_v19 = vpop.f32.mrb[22].mxu0 }
 0x2fc   :  { %726 = vst [vmem:[#allocation10 + $0x28] sm:$0xff] %v710_v17  ;;  %v662_v4 = vadd.f32 %v1008_v19, %v1390_v11  ;;  %v656_v20 = vpop.f32.mrb[23].mxu0 }
 0x2fd   :  { %725 = vst [vmem:[#allocation10 + $0x20] sm:$0xff] %v709_v18  ;;  %v657_v2 = vadd.f32 %v656_v20, %v1388_v10 }
 0x2fe   :  { %v712_v21 = vmax.f32 %v662_v4, 0.0 }
 0x2ff   :  { %v711_v22 = vmax.f32 %v657_v2, 0.0  ;;  %v1011_v23 = vpop.f32.mrb[16].mxu1 }
 0x300   :  { %728 = vst [vmem:[#allocation10 + $0x38] sm:$0xff] %v712_v21  ;;  %v672_v7 = vadd.f32 %v1011_v23, %v1396_v14  ;;  %v666_v26 = vpop.f32.mrb[17].mxu1 }
 0x301   :  { %727 = vst [vmem:[#allocation10 + $0x30] sm:$0xff] %v711_v22  ;;  %v667_v6 = vadd.f32 %v666_v26, %v1394_v13 }
 0x302   :  { %v714_v27 = vmax.f32 %v672_v7, 0.0 }
 0x303   :  { %v713_v28 = vmax.f32 %v667_v6, 0.0  ;;  %v1014_v29 = vpop.f32.mrb[18].mxu1 }
 0x304   :  { %730 = vst [vmem:[#allocation10 + $0x48] sm:$0xff] %v714_v27  ;;  %v682_v11 = vadd.f32 %v1014_v29, %v1402_v25  ;;  %v676_v32 = vpop.f32.mrb[19].mxu1 }
 0x305   :  { %729 = vst [vmem:[#allocation10 + $0x40] sm:$0xff] %v713_v28  ;;  %v677_v10 = vadd.f32 %v676_v32, %v1400_v24 }
 0x306   :  { %v716_v33 = vmax.f32 %v682_v11, 0.0 }
 0x307   :  { %v715_v34 = vmax.f32 %v677_v10, 0.0  ;;  %v1017_v35 = vpop.f32.mrb[20].mxu1 }
 0x308   :  { %732 = vst [vmem:[#allocation10 + $0x58] sm:$0xff] %v716_v33  ;;  %v692_v14 = vadd.f32 %v1017_v35, %v1408_v31  ;;  %v686_v38 = vpop.f32.mrb[21].mxu1 }
 0x309   :  { %731 = vst [vmem:[#allocation10 + $0x50] sm:$0xff] %v715_v34  ;;  %v687_v13 = vadd.f32 %v686_v38, %v1406_v30 }
 0x30a   :  { %v718_v39 = vmax.f32 %v692_v14, 0.0 }
 0x30b   :  { %v717_v40 = vmax.f32 %v687_v13, 0.0  ;;  %v1020_v41 = vpop.f32.mrb[22].mxu1 }
 0x30c   :  { %734 = vst [vmem:[#allocation10 + $0x68] sm:$0xff] %v718_v39  ;;  %v702_v25 = vadd.f32 %v1020_v41, %v1414_v37  ;;  %v696_v42 = vpop.f32.mrb[23].mxu1 }
 0x30d   :  { %733 = vst [vmem:[#allocation10 + $0x60] sm:$0xff] %v717_v40  ;;  %v697_v24 = vadd.f32 %v696_v42, %v1412_v36 }
 0x30e   :  { %v720_v43 = vmax.f32 %v702_v25, 0.0 }
 0x30f   :  { %v719_v44 = vmax.f32 %v697_v24, 0.0 }
 0x310   :  { %736 = vst [vmem:[#allocation10 + $0x78] sm:$0xff] %v720_v43 }
 0x311   :  { %735 = vst [vmem:[#allocation10 + $0x70] sm:$0xff] %v719_v44 }
 0x312   :  { %1240 = shalt.err (!%p1237_p8)
}
 0x313   :  { %s1241_s22 = scalar_lea.hbm %s1457_s5, 2048 }
 0x314   :  { %p1242_p9 = scmp.ne.s32.totalorder %s1457_s5, %s1241_s22  ;;  %p1245_p10 = scmp.lt.u32.totalorder %s1241_s22, %s1457_s5 }
 0x316   :  { %p1247_p11 = pnand %p1245_p10, %p1242_p9 }
 0x318   :  { %1250 = shalt.err (!%p1247_p11)
}
 0x319   :  { %748 = dma.vmem_to_hbm [thread:$0]  %s743_s17, 2048, %s1457_s5, [#allocation4], %s1261_s30, %s1261_s30, %s1262_s6  }
 0x31a   :  { %1257 = dma.done.wait [#allocation4], 2048  }
 0x31b   :  { %1258 = vsyncadd [#allocation4], 4294965248 }
 0x31c   :  { %752 = vsyncpa [#allocation3], 1 }
 0x31d   :  { %753 = vsyncpa [#allocation6], 1 }
 0x31e   :  { %754 = vsyncpa [#allocation9], 1 }
 0x31f   :  { %755 = vsyncpa [#allocation4], 1 }

</bundles_post_ra>
